<compile_context>
chip_gen: v5e
topology: v5e:2x2
jax: 0.10.0
libtpu: 0.0.40
codegen_flags: <defaults>
</compile_context>

<pallas_src>
import math

import jax
import jax.numpy as jnp
import numpy as np
from jax.experimental import pallas as pl
from jax.experimental.pallas import tpu as pltpu

LN_EPS = 1e-5  # torch.nn.LayerNorm default


def _layer_norm(x, gamma, beta):
    mean = jnp.mean(x, axis=-1, keepdims=True)
    var = jnp.mean((x - mean) ** 2, axis=-1, keepdims=True)
    return (x - mean) * jax.lax.rsqrt(var + LN_EPS) * gamma + beta


def encoder_block_kernel(
    x_ref,
    wq_ref, bq_ref, wk_ref, bk_ref, wv_ref, bv_ref, wo_ref, bo_ref,
    g1_ref, be1_ref,
    w1_ref, b1_ref, w2_ref, b2_ref,
    g2_ref, be2_ref,
    o_ref,
):
    f32 = jnp.float32
    bf16 = jnp.bfloat16

    # ---- load every operand exactly once (no re-reads in unrolled paths) ----
    x = x_ref[0].astype(f32)                   # (S, D)
    wq = wq_ref[...]; bq = bq_ref[...]         # (H, D, hd) bf16 / (H, 1, hd) f32
    wk = wk_ref[...]; bk = bk_ref[...]
    wv = wv_ref[...]; bv = bv_ref[...]
    wo = wo_ref[...]; bo = bo_ref[...]         # (H, hd, D) bf16 / (1, D) f32
    g1 = g1_ref[...]; be1 = be1_ref[...]
    w1 = w1_ref[...]; b1 = b1_ref[...]
    w2 = w2_ref[...]; b2 = b2_ref[...]
    g2 = g2_ref[...]; be2 = be2_ref[...]

    S, D = x.shape
    H, _, hd = wq.shape
    scale = 1.0 / math.sqrt(hd)

    # ---- skip1: LayerNorm -> MultiHeadedAttention -> residual ---------------
    xn = _layer_norm(x, g1, be1)                                     # f32
    xn_h = jnp.broadcast_to(xn.astype(bf16), (H, S, D))              # (H, S, D)

    # head-major Q/K/V via batched einsums (batch dim leading, no transposes)
    q = jnp.einsum("hsd,hdf->hsf", xn_h, wq, preferred_element_type=f32) + bq
    k = jnp.einsum("hsd,hdf->hsf", xn_h, wk, preferred_element_type=f32) + bk
    v = jnp.einsum("hsd,hdf->hsf", xn_h, wv, preferred_element_type=f32) + bv

    # scores contract the last dim of both q and k -> no explicit K^T
    q = (q * scale).astype(bf16)
    s = jnp.einsum("hqf,hkf->hqk", q, k.astype(bf16),
                   preferred_element_type=f32)                       # (H, S, S)
    m = jnp.max(s, axis=-1, keepdims=True)
    p = jnp.exp(s - m)                                               # f32, unnormalized
    denom = jnp.sum(p, axis=-1, keepdims=True)                       # (H, S, 1)

    ctx = jnp.einsum("hqk,hkf->hqf", p.astype(bf16), v.astype(bf16),
                     preferred_element_type=f32)                     # (H, S, hd)
    # deferred softmax normalization on the (S, hd) context via EUP reciprocal
    ctx = ctx * pl.reciprocal(denom, approx=True)

    # output projection with the head merge folded in: sum_h ctx[h] @ Wo[h]
    per_head = jnp.einsum("hqf,hfd->hqd", ctx.astype(bf16), wo,
                          preferred_element_type=f32)                # (H, S, D)
    attn_out = jnp.sum(per_head, axis=0) + bo                        # (S, D)
    x1 = x + attn_out                                                # residual 1

    # ---- skip2: LayerNorm -> FFN (Linear-ReLU-Linear) -> residual -----------
    xn2 = _layer_norm(x1, g2, be2)
    h1 = jnp.maximum(
        jnp.dot(xn2.astype(bf16), w1, preferred_element_type=f32) + b1, 0.0)
    ffn = jnp.dot(h1.astype(bf16), w2, preferred_element_type=f32) + b2

    o_ref[0] = (x1 + ffn).astype(o_ref.dtype)


def encoder_block(x, params, num_heads):
    B, S, D = x.shape
    assert D % num_heads == 0, "d_embed must be divisible by num_heads"
    hd = D // num_heads
    bf16, f32 = jnp.bfloat16, jnp.float32

    # Wrapper-side layout plumbing (would be done once at weight-load time):
    # split projection weights per head so the kernel never lane-slices.
    def split_in(w):    # (D, D) -> (H, D, hd), bf16
        return w.reshape(D, num_heads, hd).transpose(1, 0, 2).astype(bf16)

    def split_bias(b):  # (1, D) -> (H, 1, hd), f32
        return b.reshape(num_heads, 1, hd).astype(f32)

    weights = [
        split_in(params["wq"]), split_bias(params["bq"]),
        split_in(params["wk"]), split_bias(params["bk"]),
        split_in(params["wv"]), split_bias(params["bv"]),
        params["wo"].reshape(num_heads, hd, D).astype(bf16),   # (H, hd, D)
        params["bo"].astype(f32),
        params["g1"].astype(f32), params["be1"].astype(f32),
        params["w1"].astype(bf16), params["b1"].astype(f32),
        params["w2"].astype(bf16), params["b2"].astype(f32),
        params["g2"].astype(f32), params["be2"].astype(f32),
    ]

    def const_spec(arr):  # weights: same full block every grid step
        n = arr.ndim
        return pl.BlockSpec(arr.shape, lambda b, _n=n: (0,) * _n)

    in_specs = [pl.BlockSpec((1, S, D), lambda b: (b, 0, 0))]
    in_specs += [const_spec(w) for w in weights]

    return pl.pallas_call(
        encoder_block_kernel,
        out_shape=jax.ShapeDtypeStruct((B, S, D), x.dtype),
        grid=(B,),
        in_specs=in_specs,
        out_specs=pl.BlockSpec((1, S, D), lambda b: (b, 0, 0)),
        compiler_params=pltpu.CompilerParams(
            dimension_semantics=("parallel",)),   # v7x: shard batch over 2 TCs
    )(x, *weights)


# ---------------- pure-JAX f32 reference (mirrors the PyTorch forward) -------
def reference_forward(x, p, num_heads):
    B, S, D = x.shape
    hd = D // num_heads

    def ln(y, g, b):
        m = y.mean(-1, keepdims=True)
        v = ((y - m) ** 2).mean(-1, keepdims=True)
        return (y - m) / jnp.sqrt(v + LN_EPS) * g + b

    xn = ln(x, p["g1"], p["be1"])
    q = xn @ p["wq"] + p["bq"]
    k = xn @ p["wk"] + p["bk"]
    v = xn @ p["wv"] + p["bv"]
    q = q.reshape(B, S, num_heads, hd).transpose(0, 2, 1, 3)
    k = k.reshape(B, S, num_heads, hd).transpose(0, 2, 1, 3)
    v = v.reshape(B, S, num_heads, hd).transpose(0, 2, 1, 3)
    scores = jnp.einsum("bhqd,bhkd->bhqk", q, k) / math.sqrt(hd)
    attn = jax.nn.softmax(scores, axis=-1)
    out = jnp.einsum("bhqk,bhkd->bhqd", attn, v)
    out = out.transpose(0, 2, 1, 3).reshape(B, S, D)
    out = out @ p["wo"] + p["bo"]
    x1 = x + out

    xn2 = ln(x1, p["g2"], p["be2"])
    ffn = jnp.maximum(xn2 @ p["w1"] + p["b1"], 0.0) @ p["w2"] + p["b2"]
    return x1 + ffn


if __name__ == "__main__":
    # config: d_embed=32, num_attention_heads=4, feedforward_dim=64
    B, S, D, H, F = 2, 8, 32, 4, 64

    key = jax.random.PRNGKey(0)
    keys = jax.random.split(key, 16)

    def init(k, shape, scale=0.1):
        return (scale * jax.random.normal(k, shape)).astype(jnp.float32)

    # Linear weights stored as (in, out) == torch weight.T ; biases as (1, out).
    params = {
        "wq": init(keys[0], (D, D)), "bq": init(keys[1], (1, D)),
        "wk": init(keys[2], (D, D)), "bk": init(keys[3], (1, D)),
        "wv": init(keys[4], (D, D)), "bv": init(keys[5], (1, D)),
        "wo": init(keys[6], (D, D)), "bo": init(keys[7], (1, D)),
        "g1": jnp.ones((1, D), jnp.float32), "be1": jnp.zeros((1, D), jnp.float32),
        "w1": init(keys[8], (D, F)), "b1": init(keys[9], (1, F)),
        "w2": init(keys[10], (F, D)), "b2": init(keys[11], (1, D)),
        "g2": jnp.ones((1, D), jnp.float32), "be2": jnp.zeros((1, D), jnp.float32),
    }

    x = jax.random.normal(keys[12], (B, S, D), dtype=jnp.float32)

    out = encoder_block(x, params, num_heads=H)
    out = jax.block_until_ready(out)

    ref = jax.block_until_ready(reference_forward(x, params, num_heads=H))
    assert out.shape == (B, S, D)
    # Tolerance accounts for bf16 matmul operands (f32 accumulation) and the
    # approximate EUP reciprocal in the softmax, compared against an f32 ref.
    np.testing.assert_allclose(np.asarray(out), np.asarray(ref), rtol=3e-2, atol=3e-2)

    print("KERNEL_OK")
</pallas_src>

<mosaic_0001>
module attributes {stable_mosaic.version = 11 : i64} {
  func.func @encoder_block_kernel(%arg0: i32, %arg1: memref<1x8x32xf32, #tpu.memory_space<vmem>>, %arg2: memref<4x32x8xbf16, #tpu.memory_space<vmem>>, %arg3: memref<4x1x8xf32, #tpu.memory_space<vmem>>, %arg4: memref<4x32x8xbf16, #tpu.memory_space<vmem>>, %arg5: memref<4x1x8xf32, #tpu.memory_space<vmem>>, %arg6: memref<4x32x8xbf16, #tpu.memory_space<vmem>>, %arg7: memref<4x1x8xf32, #tpu.memory_space<vmem>>, %arg8: memref<4x8x32xbf16, #tpu.memory_space<vmem>>, %arg9: memref<1x32xf32, #tpu.memory_space<vmem>>, %arg10: memref<1x32xf32, #tpu.memory_space<vmem>>, %arg11: memref<1x32xf32, #tpu.memory_space<vmem>>, %arg12: memref<32x64xbf16, #tpu.memory_space<vmem>>, %arg13: memref<1x64xf32, #tpu.memory_space<vmem>>, %arg14: memref<64x32xbf16, #tpu.memory_space<vmem>>, %arg15: memref<1x32xf32, #tpu.memory_space<vmem>>, %arg16: memref<1x32xf32, #tpu.memory_space<vmem>>, %arg17: memref<1x32xf32, #tpu.memory_space<vmem>>, %arg18: memref<1x8x32xf32, #tpu.memory_space<vmem>>) attributes {dimension_semantics = [#tpu.dimension_semantics<parallel>], iteration_bounds = array<i64: 2>, scalar_prefetch = 0 : i64, scratch_operands = 0 : i64, tpu.core_type = #tpu.core_type<tc>, window_params = [{transform_indices = @transform_0, window_bounds = array<i64: 1, 8, 32>}, {pipeline_mode = #tpu.pipeline_mode<synchronous>, transform_indices = @transform_1, window_bounds = array<i64: 4, 32, 8>}, {pipeline_mode = #tpu.pipeline_mode<synchronous>, transform_indices = @transform_2, window_bounds = array<i64: 4, 1, 8>}, {pipeline_mode = #tpu.pipeline_mode<synchronous>, transform_indices = @transform_3, window_bounds = array<i64: 4, 32, 8>}, {pipeline_mode = #tpu.pipeline_mode<synchronous>, transform_indices = @transform_4, window_bounds = array<i64: 4, 1, 8>}, {pipeline_mode = #tpu.pipeline_mode<synchronous>, transform_indices = @transform_5, window_bounds = array<i64: 4, 32, 8>}, {pipeline_mode = #tpu.pipeline_mode<synchronous>, transform_indices = @transform_6, window_bounds = array<i64: 4, 1, 8>}, {pipeline_mode = #tpu.pipeline_mode<synchronous>, transform_indices = @transform_7, window_bounds = array<i64: 4, 8, 32>}, {pipeline_mode = #tpu.pipeline_mode<synchronous>, transform_indices = @transform_8, window_bounds = array<i64: 1, 32>}, {pipeline_mode = #tpu.pipeline_mode<synchronous>, transform_indices = @transform_9, window_bounds = array<i64: 1, 32>}, {pipeline_mode = #tpu.pipeline_mode<synchronous>, transform_indices = @transform_10, window_bounds = array<i64: 1, 32>}, {pipeline_mode = #tpu.pipeline_mode<synchronous>, transform_indices = @transform_11, window_bounds = array<i64: 32, 64>}, {pipeline_mode = #tpu.pipeline_mode<synchronous>, transform_indices = @transform_12, window_bounds = array<i64: 1, 64>}, {pipeline_mode = #tpu.pipeline_mode<synchronous>, transform_indices = @transform_13, window_bounds = array<i64: 64, 32>}, {pipeline_mode = #tpu.pipeline_mode<synchronous>, transform_indices = @transform_14, window_bounds = array<i64: 1, 32>}, {pipeline_mode = #tpu.pipeline_mode<synchronous>, transform_indices = @transform_15, window_bounds = array<i64: 1, 32>}, {pipeline_mode = #tpu.pipeline_mode<synchronous>, transform_indices = @transform_16, window_bounds = array<i64: 1, 32>}, {transform_indices = @transform_17, window_bounds = array<i64: 1, 8, 32>}]} {
    %c0 = arith.constant 0 : index
    %c0_0 = arith.constant 0 : index
    %c0_1 = arith.constant 0 : index
    %0 = vector.load %arg1[%c0, %c0_0, %c0_1] : memref<1x8x32xf32, #tpu.memory_space<vmem>>, vector<1x8x32xf32>
    %1 = vector.shape_cast %0 : vector<1x8x32xf32> to vector<8x32xf32>
    %c0_2 = arith.constant 0 : index
    %c0_3 = arith.constant 0 : index
    %c0_4 = arith.constant 0 : index
    %2 = vector.load %arg2[%c0_2, %c0_3, %c0_4] : memref<4x32x8xbf16, #tpu.memory_space<vmem>>, vector<4x32x8xbf16>
    %c0_5 = arith.constant 0 : index
    %c0_6 = arith.constant 0 : index
    %c0_7 = arith.constant 0 : index
    %3 = vector.load %arg3[%c0_5, %c0_6, %c0_7] : memref<4x1x8xf32, #tpu.memory_space<vmem>>, vector<4x1x8xf32>
    %c0_8 = arith.constant 0 : index
    %c0_9 = arith.constant 0 : index
    %c0_10 = arith.constant 0 : index
    %4 = vector.load %arg4[%c0_8, %c0_9, %c0_10] : memref<4x32x8xbf16, #tpu.memory_space<vmem>>, vector<4x32x8xbf16>
    %c0_11 = arith.constant 0 : index
    %c0_12 = arith.constant 0 : index
    %c0_13 = arith.constant 0 : index
    %5 = vector.load %arg5[%c0_11, %c0_12, %c0_13] : memref<4x1x8xf32, #tpu.memory_space<vmem>>, vector<4x1x8xf32>
    %c0_14 = arith.constant 0 : index
    %c0_15 = arith.constant 0 : index
    %c0_16 = arith.constant 0 : index
    %6 = vector.load %arg6[%c0_14, %c0_15, %c0_16] : memref<4x32x8xbf16, #tpu.memory_space<vmem>>, vector<4x32x8xbf16>
    %c0_17 = arith.constant 0 : index
    %c0_18 = arith.constant 0 : index
    %c0_19 = arith.constant 0 : index
    %7 = vector.load %arg7[%c0_17, %c0_18, %c0_19] : memref<4x1x8xf32, #tpu.memory_space<vmem>>, vector<4x1x8xf32>
    %c0_20 = arith.constant 0 : index
    %c0_21 = arith.constant 0 : index
    %c0_22 = arith.constant 0 : index
    %8 = vector.load %arg8[%c0_20, %c0_21, %c0_22] : memref<4x8x32xbf16, #tpu.memory_space<vmem>>, vector<4x8x32xbf16>
    %c0_23 = arith.constant 0 : index
    %c0_24 = arith.constant 0 : index
    %9 = vector.load %arg9[%c0_23, %c0_24] : memref<1x32xf32, #tpu.memory_space<vmem>>, vector<1x32xf32>
    %c0_25 = arith.constant 0 : index
    %c0_26 = arith.constant 0 : index
    %10 = vector.load %arg10[%c0_25, %c0_26] : memref<1x32xf32, #tpu.memory_space<vmem>>, vector<1x32xf32>
    %c0_27 = arith.constant 0 : index
    %c0_28 = arith.constant 0 : index
    %11 = vector.load %arg11[%c0_27, %c0_28] : memref<1x32xf32, #tpu.memory_space<vmem>>, vector<1x32xf32>
    %c0_29 = arith.constant 0 : index
    %c0_30 = arith.constant 0 : index
    %12 = vector.load %arg12[%c0_29, %c0_30] : memref<32x64xbf16, #tpu.memory_space<vmem>>, vector<32x64xbf16>
    %c0_31 = arith.constant 0 : index
    %c0_32 = arith.constant 0 : index
    %13 = vector.load %arg13[%c0_31, %c0_32] : memref<1x64xf32, #tpu.memory_space<vmem>>, vector<1x64xf32>
    %c0_33 = arith.constant 0 : index
    %c0_34 = arith.constant 0 : index
    %14 = vector.load %arg14[%c0_33, %c0_34] : memref<64x32xbf16, #tpu.memory_space<vmem>>, vector<64x32xbf16>
    %c0_35 = arith.constant 0 : index
    %c0_36 = arith.constant 0 : index
    %15 = vector.load %arg15[%c0_35, %c0_36] : memref<1x32xf32, #tpu.memory_space<vmem>>, vector<1x32xf32>
    %c0_37 = arith.constant 0 : index
    %c0_38 = arith.constant 0 : index
    %16 = vector.load %arg16[%c0_37, %c0_38] : memref<1x32xf32, #tpu.memory_space<vmem>>, vector<1x32xf32>
    %c0_39 = arith.constant 0 : index
    %c0_40 = arith.constant 0 : index
    %17 = vector.load %arg17[%c0_39, %c0_40] : memref<1x32xf32, #tpu.memory_space<vmem>>, vector<1x32xf32>
    %cst = arith.constant dense<0.000000e+00> : vector<8xf32>
    %18 = vector.multi_reduction <add>, %1, %cst [1] : vector<8x32xf32> to vector<8xf32>
    %19 = vector.shape_cast %18 : vector<8xf32> to vector<8x1xf32>
    %cst_41 = arith.constant 3.200000e+01 : f32
    %20 = vector.broadcast %cst_41 : f32 to vector<8x1xf32>
    %21 = arith.divf %19, %20 : vector<8x1xf32>
    %22 = vector.broadcast %21 : vector<8x1xf32> to vector<8x32xf32>
    %23 = arith.subf %1, %22 : vector<8x32xf32>
    %24 = arith.mulf %23, %23 : vector<8x32xf32>
    %cst_42 = arith.constant dense<0.000000e+00> : vector<8xf32>
    %25 = vector.multi_reduction <add>, %24, %cst_42 [1] : vector<8x32xf32> to vector<8xf32>
    %26 = vector.shape_cast %25 : vector<8xf32> to vector<8x1xf32>
    %cst_43 = arith.constant 3.200000e+01 : f32
    %27 = vector.broadcast %cst_43 : f32 to vector<8x1xf32>
    %28 = arith.divf %26, %27 : vector<8x1xf32>
    %29 = vector.broadcast %21 : vector<8x1xf32> to vector<8x32xf32>
    %30 = arith.subf %1, %29 : vector<8x32xf32>
    %cst_44 = arith.constant 9.99999974E-6 : f32
    %31 = vector.broadcast %cst_44 : f32 to vector<8x1xf32>
    %32 = arith.addf %28, %31 : vector<8x1xf32>
    %33 = math.rsqrt %32 : vector<8x1xf32>
    %34 = vector.broadcast %33 : vector<8x1xf32> to vector<8x32xf32>
    %35 = arith.mulf %30, %34 : vector<8x32xf32>
    %36 = vector.broadcast %10 : vector<1x32xf32> to vector<8x32xf32>
    %37 = arith.mulf %35, %36 : vector<8x32xf32>
    %38 = vector.broadcast %11 : vector<1x32xf32> to vector<8x32xf32>
    %39 = arith.addf %37, %38 : vector<8x32xf32>
    %40 = arith.truncf %39 : vector<8x32xf32> to vector<8x32xbf16>
    %41 = vector.shape_cast %40 : vector<8x32xbf16> to vector<1x8x32xbf16>
    %42 = vector.broadcast %41 : vector<1x8x32xbf16> to vector<4x8x32xbf16>
    "tpu.trace_start"() <{level = 10 : i32, message = "hsd,hdf->hsf"}> : () -> ()
    %cst_45 = arith.constant dense<0.000000e+00> : vector<4x8x8xf32>
    %43 = tpu.matmul %42, %2, %cst_45 {dimension_numbers = #tpu.dot_dimension_numbers<[2], [1], [1], [2], [0, 0, 0, 1, 1, 2], [0], [0]>} : vector<4x8x32xbf16>, vector<4x32x8xbf16>, vector<4x8x8xf32> -> vector<4x8x8xf32>
    "tpu.trace_stop"() : () -> ()
    %44 = vector.broadcast %3 : vector<4x1x8xf32> to vector<4x8x8xf32>
    %45 = arith.addf %43, %44 : vector<4x8x8xf32>
    "tpu.trace_start"() <{level = 10 : i32, message = "hsd,hdf->hsf"}> : () -> ()
    %cst_46 = arith.constant dense<0.000000e+00> : vector<4x8x8xf32>
    %46 = tpu.matmul %42, %4, %cst_46 {dimension_numbers = #tpu.dot_dimension_numbers<[2], [1], [1], [2], [0, 0, 0, 1, 1, 2], [0], [0]>} : vector<4x8x32xbf16>, vector<4x32x8xbf16>, vector<4x8x8xf32> -> vector<4x8x8xf32>
    "tpu.trace_stop"() : () -> ()
    %47 = vector.broadcast %5 : vector<4x1x8xf32> to vector<4x8x8xf32>
    %48 = arith.addf %46, %47 : vector<4x8x8xf32>
    "tpu.trace_start"() <{level = 10 : i32, message = "hsd,hdf->hsf"}> : () -> ()
    %cst_47 = arith.constant dense<0.000000e+00> : vector<4x8x8xf32>
    %49 = tpu.matmul %42, %6, %cst_47 {dimension_numbers = #tpu.dot_dimension_numbers<[2], [1], [1], [2], [0, 0, 0, 1, 1, 2], [0], [0]>} : vector<4x8x32xbf16>, vector<4x32x8xbf16>, vector<4x8x8xf32> -> vector<4x8x8xf32>
    "tpu.trace_stop"() : () -> ()
    %50 = vector.broadcast %7 : vector<4x1x8xf32> to vector<4x8x8xf32>
    %51 = arith.addf %49, %50 : vector<4x8x8xf32>
    %cst_48 = arith.constant 0.353553385 : f32
    %52 = vector.broadcast %cst_48 : f32 to vector<4x8x8xf32>
    %53 = arith.mulf %45, %52 : vector<4x8x8xf32>
    %54 = arith.truncf %53 : vector<4x8x8xf32> to vector<4x8x8xbf16>
    %55 = arith.truncf %48 : vector<4x8x8xf32> to vector<4x8x8xbf16>
    "tpu.trace_start"() <{level = 10 : i32, message = "hqf,hkf->hqk"}> : () -> ()
    %cst_49 = arith.constant dense<0.000000e+00> : vector<4x8x8xf32>
    %56 = tpu.matmul %54, %55, %cst_49 {dimension_numbers = #tpu.dot_dimension_numbers<[2], [2], [1], [1], [0, 0, 0, 1, 1, 1], [0], [0]>} : vector<4x8x8xbf16>, vector<4x8x8xbf16>, vector<4x8x8xf32> -> vector<4x8x8xf32>
    "tpu.trace_stop"() : () -> ()
    %cst_50 = arith.constant dense<0xFF800000> : vector<4x8xf32>
    %57 = vector.multi_reduction <maximumf>, %56, %cst_50 [2] : vector<4x8x8xf32> to vector<4x8xf32>
    %58 = vector.shape_cast %57 : vector<4x8xf32> to vector<4x8x1xf32>
    %59 = vector.broadcast %58 : vector<4x8x1xf32> to vector<4x8x8xf32>
    %60 = arith.subf %56, %59 : vector<4x8x8xf32>
    %61 = math.exp %60 : vector<4x8x8xf32>
    %cst_51 = arith.constant dense<0.000000e+00> : vector<4x8xf32>
    %62 = vector.multi_reduction <add>, %61, %cst_51 [2] : vector<4x8x8xf32> to vector<4x8xf32>
    %63 = vector.shape_cast %62 : vector<4x8xf32> to vector<4x8x1xf32>
    %64 = arith.truncf %61 : vector<4x8x8xf32> to vector<4x8x8xbf16>
    %65 = arith.truncf %51 : vector<4x8x8xf32> to vector<4x8x8xbf16>
    "tpu.trace_start"() <{level = 10 : i32, message = "hqk,hkf->hqf"}> : () -> ()
    %cst_52 = arith.constant dense<0.000000e+00> : vector<4x8x8xf32>
    %66 = tpu.matmul %64, %65, %cst_52 {dimension_numbers = #tpu.dot_dimension_numbers<[2], [1], [1], [2], [0, 0, 0, 1, 1, 2], [0], [0]>} : vector<4x8x8xbf16>, vector<4x8x8xbf16>, vector<4x8x8xf32> -> vector<4x8x8xf32>
    "tpu.trace_stop"() : () -> ()
    %67 = tpu.reciprocal %63 {approx = true} : vector<4x8x1xf32> -> vector<4x8x1xf32>
    %68 = vector.broadcast %67 : vector<4x8x1xf32> to vector<4x8x8xf32>
    %69 = arith.mulf %66, %68 : vector<4x8x8xf32>
    %70 = arith.truncf %69 : vector<4x8x8xf32> to vector<4x8x8xbf16>
    "tpu.trace_start"() <{level = 10 : i32, message = "hqf,hfd->hqd"}> : () -> ()
    %cst_53 = arith.constant dense<0.000000e+00> : vector<4x8x32xf32>
    %71 = tpu.matmul %70, %8, %cst_53 {dimension_numbers = #tpu.dot_dimension_numbers<[2], [1], [1], [2], [0, 0, 0, 1, 1, 2], [0], [0]>} : vector<4x8x8xbf16>, vector<4x8x32xbf16>, vector<4x8x32xf32> -> vector<4x8x32xf32>
    "tpu.trace_stop"() : () -> ()
    %cst_54 = arith.constant dense<0.000000e+00> : vector<8x32xf32>
    %72 = vector.multi_reduction <add>, %71, %cst_54 [0] : vector<4x8x32xf32> to vector<8x32xf32>
    %73 = vector.broadcast %9 : vector<1x32xf32> to vector<8x32xf32>
    %74 = arith.addf %72, %73 : vector<8x32xf32>
    %75 = arith.addf %1, %74 : vector<8x32xf32>
    %cst_55 = arith.constant dense<0.000000e+00> : vector<8xf32>
    %76 = vector.multi_reduction <add>, %75, %cst_55 [1] : vector<8x32xf32> to vector<8xf32>
    %77 = vector.shape_cast %76 : vector<8xf32> to vector<8x1xf32>
    %cst_56 = arith.constant 3.200000e+01 : f32
    %78 = vector.broadcast %cst_56 : f32 to vector<8x1xf32>
    %79 = arith.divf %77, %78 : vector<8x1xf32>
    %80 = vector.broadcast %79 : vector<8x1xf32> to vector<8x32xf32>
    %81 = arith.subf %75, %80 : vector<8x32xf32>
    %82 = arith.mulf %81, %81 : vector<8x32xf32>
    %cst_57 = arith.constant dense<0.000000e+00> : vector<8xf32>
    %83 = vector.multi_reduction <add>, %82, %cst_57 [1] : vector<8x32xf32> to vector<8xf32>
    %84 = vector.shape_cast %83 : vector<8xf32> to vector<8x1xf32>
    %cst_58 = arith.constant 3.200000e+01 : f32
    %85 = vector.broadcast %cst_58 : f32 to vector<8x1xf32>
    %86 = arith.divf %84, %85 : vector<8x1xf32>
    %87 = vector.broadcast %79 : vector<8x1xf32> to vector<8x32xf32>
    %88 = arith.subf %75, %87 : vector<8x32xf32>
    %cst_59 = arith.constant 9.99999974E-6 : f32
    %89 = vector.broadcast %cst_59 : f32 to vector<8x1xf32>
    %90 = arith.addf %86, %89 : vector<8x1xf32>
    %91 = math.rsqrt %90 : vector<8x1xf32>
    %92 = vector.broadcast %91 : vector<8x1xf32> to vector<8x32xf32>
    %93 = arith.mulf %88, %92 : vector<8x32xf32>
    %94 = vector.broadcast %16 : vector<1x32xf32> to vector<8x32xf32>
    %95 = arith.mulf %93, %94 : vector<8x32xf32>
    %96 = vector.broadcast %17 : vector<1x32xf32> to vector<8x32xf32>
    %97 = arith.addf %95, %96 : vector<8x32xf32>
    %98 = arith.truncf %97 : vector<8x32xf32> to vector<8x32xbf16>
    %cst_60 = arith.constant dense<0.000000e+00> : vector<8x64xf32>
    %99 = tpu.matmul %98, %12, %cst_60 {dimension_numbers = #tpu.dot_dimension_numbers<[1], [0], [0], [1], [0, 0, 1, 1], [], []>} : vector<8x32xbf16>, vector<32x64xbf16>, vector<8x64xf32> -> vector<8x64xf32>
    %100 = vector.broadcast %13 : vector<1x64xf32> to vector<8x64xf32>
    %101 = arith.addf %99, %100 : vector<8x64xf32>
    %cst_61 = arith.constant 0.000000e+00 : f32
    %102 = vector.broadcast %cst_61 : f32 to vector<8x64xf32>
    %103 = arith.maximumf %101, %102 : vector<8x64xf32>
    %104 = arith.truncf %103 : vector<8x64xf32> to vector<8x64xbf16>
    %cst_62 = arith.constant dense<0.000000e+00> : vector<8x32xf32>
    %105 = tpu.matmul %104, %14, %cst_62 {dimension_numbers = #tpu.dot_dimension_numbers<[1], [0], [0], [1], [0, 0, 1, 1], [], []>} : vector<8x64xbf16>, vector<64x32xbf16>, vector<8x32xf32> -> vector<8x32xf32>
    %106 = vector.broadcast %15 : vector<1x32xf32> to vector<8x32xf32>
    %107 = arith.addf %105, %106 : vector<8x32xf32>
    %108 = arith.addf %75, %107 : vector<8x32xf32>
    %c0_63 = arith.constant 0 : index
    %c0_64 = arith.constant 0 : index
    %c0_65 = arith.constant 0 : index
    %109 = vector.load %arg18[%c0_63, %c0_64, %c0_65] : memref<1x8x32xf32, #tpu.memory_space<vmem>>, vector<1x8x32xf32>
    %110 = vector.shape_cast %109 : vector<1x8x32xf32> to vector<8x32xf32>
    %111 = vector.shape_cast %108 : vector<8x32xf32> to vector<1x8x32xf32>
    tpu.vector_store %arg18[%c0_63, %c0_64, %c0_65], %111 {strides = array<i32>} : memref<1x8x32xf32, #tpu.memory_space<vmem>>, vector<1x8x32xf32>,
    return
  }
  func.func @transform_0(%arg0: i32) -> (i32, i32, i32) {
    %c0_i32 = arith.constant 0 : i32
    %c0_i32_0 = arith.constant 0 : i32
    %c0_i32_1 = arith.constant 0 : i32
    return %arg0, %c0_i32, %c0_i32_0 : i32, i32, i32
  }
  func.func @transform_1(%arg0: i32) -> (i32, i32, i32) {
    %c0_i32 = arith.constant 0 : i32
    %c0_i32_0 = arith.constant 0 : i32
    %c0_i32_1 = arith.constant 0 : i32
    %c0_i32_2 = arith.constant 0 : i32
    return %c0_i32, %c0_i32_0, %c0_i32_1 : i32, i32, i32
  }
  func.func @transform_2(%arg0: i32) -> (i32, i32, i32) {
    %c0_i32 = arith.constant 0 : i32
    %c0_i32_0 = arith.constant 0 : i32
    %c0_i32_1 = arith.constant 0 : i32
    %c0_i32_2 = arith.constant 0 : i32
    return %c0_i32, %c0_i32_0, %c0_i32_1 : i32, i32, i32
  }
  func.func @transform_3(%arg0: i32) -> (i32, i32, i32) {
    %c0_i32 = arith.constant 0 : i32
    %c0_i32_0 = arith.constant 0 : i32
    %c0_i32_1 = arith.constant 0 : i32
    %c0_i32_2 = arith.constant 0 : i32
    return %c0_i32, %c0_i32_0, %c0_i32_1 : i32, i32, i32
  }
  func.func @transform_4(%arg0: i32) -> (i32, i32, i32) {
    %c0_i32 = arith.constant 0 : i32
    %c0_i32_0 = arith.constant 0 : i32
    %c0_i32_1 = arith.constant 0 : i32
    %c0_i32_2 = arith.constant 0 : i32
    return %c0_i32, %c0_i32_0, %c0_i32_1 : i32, i32, i32
  }
  func.func @transform_5(%arg0: i32) -> (i32, i32, i32) {
    %c0_i32 = arith.constant 0 : i32
    %c0_i32_0 = arith.constant 0 : i32
    %c0_i32_1 = arith.constant 0 : i32
    %c0_i32_2 = arith.constant 0 : i32
    return %c0_i32, %c0_i32_0, %c0_i32_1 : i32, i32, i32
  }
  func.func @transform_6(%arg0: i32) -> (i32, i32, i32) {
    %c0_i32 = arith.constant 0 : i32
    %c0_i32_0 = arith.constant 0 : i32
    %c0_i32_1 = arith.constant 0 : i32
    %c0_i32_2 = arith.constant 0 : i32
    return %c0_i32, %c0_i32_0, %c0_i32_1 : i32, i32, i32
  }
  func.func @transform_7(%arg0: i32) -> (i32, i32, i32) {
    %c0_i32 = arith.constant 0 : i32
    %c0_i32_0 = arith.constant 0 : i32
    %c0_i32_1 = arith.constant 0 : i32
    %c0_i32_2 = arith.constant 0 : i32
    return %c0_i32, %c0_i32_0, %c0_i32_1 : i32, i32, i32
  }
  func.func @transform_8(%arg0: i32) -> (i32, i32) {
    %c0_i32 = arith.constant 0 : i32
    %c0_i32_0 = arith.constant 0 : i32
    %c0_i32_1 = arith.constant 0 : i32
    return %c0_i32, %c0_i32_0 : i32, i32
  }
  func.func @transform_9(%arg0: i32) -> (i32, i32) {
    %c0_i32 = arith.constant 0 : i32
    %c0_i32_0 = arith.constant 0 : i32
    %c0_i32_1 = arith.constant 0 : i32
    return %c0_i32, %c0_i32_0 : i32, i32
  }
  func.func @transform_10(%arg0: i32) -> (i32, i32) {
    %c0_i32 = arith.constant 0 : i32
    %c0_i32_0 = arith.constant 0 : i32
    %c0_i32_1 = arith.constant 0 : i32
    return %c0_i32, %c0_i32_0 : i32, i32
  }
  func.func @transform_11(%arg0: i32) -> (i32, i32) {
    %c0_i32 = arith.constant 0 : i32
    %c0_i32_0 = arith.constant 0 : i32
    %c0_i32_1 = arith.constant 0 : i32
    return %c0_i32, %c0_i32_0 : i32, i32
  }
  func.func @transform_12(%arg0: i32) -> (i32, i32) {
    %c0_i32 = arith.constant 0 : i32
    %c0_i32_0 = arith.constant 0 : i32
    %c0_i32_1 = arith.constant 0 : i32
    return %c0_i32, %c0_i32_0 : i32, i32
  }
  func.func @transform_13(%arg0: i32) -> (i32, i32) {
    %c0_i32 = arith.constant 0 : i32
    %c0_i32_0 = arith.constant 0 : i32
    %c0_i32_1 = arith.constant 0 : i32
    return %c0_i32, %c0_i32_0 : i32, i32
  }
  func.func @transform_14(%arg0: i32) -> (i32, i32) {
    %c0_i32 = arith.constant 0 : i32
    %c0_i32_0 = arith.constant 0 : i32
    %c0_i32_1 = arith.constant 0 : i32
    return %c0_i32, %c0_i32_0 : i32, i32
  }
  func.func @transform_15(%arg0: i32) -> (i32, i32) {
    %c0_i32 = arith.constant 0 : i32
    %c0_i32_0 = arith.constant 0 : i32
    %c0_i32_1 = arith.constant 0 : i32
    return %c0_i32, %c0_i32_0 : i32, i32
  }
  func.func @transform_16(%arg0: i32) -> (i32, i32) {
    %c0_i32 = arith.constant 0 : i32
    %c0_i32_0 = arith.constant 0 : i32
    %c0_i32_1 = arith.constant 0 : i32
    return %c0_i32, %c0_i32_0 : i32, i32
  }
  func.func @transform_17(%arg0: i32) -> (i32, i32, i32) {
    %c0_i32 = arith.constant 0 : i32
    %c0_i32_0 = arith.constant 0 : i32
    %c0_i32_1 = arith.constant 0 : i32
    return %arg0, %c0_i32, %c0_i32_0 : i32, i32, i32
  }
}

</mosaic_0001>

<bundles_post_ra>
// kernel: tpu_custom_call.1
= control target key start
LH: loop header
LB: loop body
LE: loop exit
PB: predicated region body
PF: predicated region fallthrough
CT: control target
= control target key end

     0   :  { %s2233_s0 = inlined_call_operand.vmem [shape: f32[2,8,32], index: 0, kind: input, shape index: {}]   ;;  %s2234_s1 = inlined_call_operand.vmem [shape: bf16[4,32,8], index: 1, kind: input, shape index: {}]   ;;  %s2235_s2 = inlined_call_operand.vmem [shape: f32[4,1,8], index: 2, kind: input, shape index: {}]   ;;  %s2236_s3 = inlined_call_operand.vmem [shape: bf16[4,32,8], index: 3, kind: input, shape index: {}]   ;;  %s2237_s4 = inlined_call_operand.vmem [shape: f32[4,1,8], index: 4, kind: input, shape index: {}]   ;;  %s2238_s5 = inlined_call_operand.vmem [shape: bf16[4,32,8], index: 5, kind: input, shape index: {}]   ;;  %s2239_s6 = inlined_call_operand.vmem [shape: f32[4,1,8], index: 6, kind: input, shape index: {}]   ;;  %s2240_s7 = inlined_call_operand.vmem [shape: bf16[4,8,32], index: 7, kind: input, shape index: {}]   ;;  %s2241_s8 = inlined_call_operand.vmem [shape: f32[1,32], index: 8, kind: input, shape index: {}]   ;;  %s2242_s9 = inlined_call_operand.vmem [shape: f32[1,32], index: 9, kind: input, shape index: {}]   ;;  %s2243_s10 = inlined_call_operand.vmem [shape: f32[1,32], index: 10, kind: input, shape index: {}]   ;;  %s2244_s11 = inlined_call_operand.vmem [shape: bf16[32,64], index: 11, kind: input, shape index: {}]   ;;  %s2245_s12 = inlined_call_operand.vmem [shape: f32[1,64], index: 12, kind: input, shape index: {}]   ;;  %s2246_s13 = inlined_call_operand.vmem [shape: bf16[64,32], index: 13, kind: input, shape index: {}]   ;;  %s2247_s14 = inlined_call_operand.vmem [shape: f32[1,32], index: 14, kind: input, shape index: {}]   ;;  %s2248_s15 = inlined_call_operand.vmem [shape: f32[1,32], index: 15, kind: input, shape index: {}]   ;;  %s2249_s16 = inlined_call_operand.vmem [shape: f32[1,32], index: 16, kind: input, shape index: {}]   ;;  %s2250_s17 = inlined_call_operand.hbm [shape: f32[2,8,32], index: 17, kind: output, shape index: {}]  }
   0x1   :  { %2257 = sst [smem:[#allocation10_spill]] %s2233_s0 }
   0x2   :  { %2258 = sst [smem:[#allocation11_spill]] %s2234_s1 }
   0x3   :  { %2259 = sst [smem:[#allocation12_spill]] %s2235_s2 }
   0x4   :  { %2260 = sst [smem:[#allocation13_spill]] %s2236_s3 }
   0x5   :  { %22 = vsyncpa [#allocation3], 0 }
   0x6   :  { %24 = vsyncpa [#allocation3 + $0x1], 0  ;;  %s1924_s24 = smov 0   ;;  %s1926_s25 = smov 0  }
   0x7   :  { %s1928_s26 = smov 0   ;;  %s1930_s27 = smov 0  }
   0x8 LB: > { %2261 = sst [smem:[#allocation5_spill]] %s1819_s24  ;;  %s1945_s28 = sadd.s32 4294967295, %s1831_s27   ;;  %s1831_s27 = sphi %s1930_s27, %s2274_s27   ;;  %s1827_s26 = sphi %s1928_s26, %s2276_s26   ;;  %s1823_s25 = sphi %s1926_s25, %s2278_s25   ;;  %s1819_s24 = sphi %s1924_s24, %s2277_s24  }
   0x9   : > { %2262 = sst [smem:[#allocation6_spill]] %s1827_s26  ;;  %s1502_s29 = sadd.s32 4294967294, %s1831_s27  }
   0xa   : > { %s1949_s0 = sadd.s32 1, %s1831_s27   ;;  %s399_s30 = sadd.s32 1, %s1827_s26 }
   0xb   : > { %2263 = sst [smem:[#allocation7_spill]] %s1949_s0  ;;  %s396_s18 = ssub.s32 %s1831_s27, %s1949_s0 }
   0xc   : > { %p409_p0 = scmp.ne.s32.totalorder %s1827_s26, %s1823_s25  ;;  %p397_p1 = scmp.eq.s32.totalorder %s396_s18, 0 }
   0xd   : > { %p410_p2 = scmp.eq.s32.totalorder %s1945_s28, 1  ;;  %p415_p3 = scmp.ne.s32.totalorder %s1823_s25, %s1819_s24 }
   0xe   : > { %p416_p4 = scmp.eq.s32.totalorder %s1502_s29, 1  ;;  %p1505_p7 = scmp.ge.s32.totalorder %s1831_s27, 1 }
   0xf   : > { %s1960_s19 = scalar_select %p397_p1, %s1827_s26, %s399_s30  }
  0x10   : > { %p1962_p5 = por %p410_p2, %p409_p0  ;;  %p1966_p6 = por %p416_p4, %p415_p3 }
  0x11   : > { %2264 = sst [smem:[#allocation8_spill]] %s1960_s19  ;;  %p489_p8 = scmp.lt.s32.totalorder %s1831_s27, 3 }
  0x12   : > { %s2266_s20 = scalar_select %p1966_p6, 1, 0 }
  0x13   : > { %p490_p9 = pnand %p1505_p7, %p489_p8 }
  0x14   : > { %2267 = sst [smem:[#allocation9_spill]] %s2266_s20  ;;  %p540_p10 = scmp.lt.s32.totalorder (!%p490_p9), %s1945_s28, 1 }
  0x15   : > { %493 = sbr.rel (%p490_p9) target bundleno = 1543 (0x607), region = 88  ;;  %s2268_s30 = sld [smem:[#allocation10_spill]] (!%p490_p9) }
  0x16   : > { %s2269_s23 = sld [smem:[#allocation11_spill]] (!%p490_p9)  ;;  %s537_s19 = sand.u32 (!%p490_p9), 1, %s1823_s25  }
  0x17   : > { %s2270_s3 = sld [smem:[#allocation13_spill]] (!%p490_p9)  ;;  %s1655_s26 = sshll.u32 (!%p490_p9), %s1945_s28, 3 }
  0x18   : > { %s2271_s2 = sld [smem:[#allocation12_spill]] (!%p490_p9) }
  0x1a   : > { %s541_s21 = scalar_select %p540_p10, %s1945_s28, 1  ;;  %vm629_vm0 = vcmask 261120   ;;  %v1833_v2 = vmov 32.0   ;;  %v1728_v39 = vld [vmem:[%s2242_s9] ss:$0 sm:$0xff]  ;;  %v1675_v46 = vld [vmem:[%s2238_s5 + $0x8] sm:$0xff] }
  0x1b   : > { %1747 = vrcp.f32 %v1833_v2  ;;  %v1729_v41 = vld [vmem:[%s2243_s10] ss:$0 sm:$0xff]  ;;  %v1677_v47 = vld [vmem:[%s2238_s5 + $0x18] sm:$0xff]  ;;  %v1679_v48 = vld [vmem:[%s2238_s5 + $0x28] sm:$0xff]  ;;  %vm1019_vm5 = vcmask 64512   ;;  %vm1143_vm6 = vcmask 1043456  }
  0x1c   : > { %s1507_s22 = sshll.u32 %s541_s21, 3  ;;  %v1659_v14 = vld [vmem:[%s2269_s23 + $0x8] sm:$0xff]  ;;  %v1661_v15 = vld [vmem:[%s2269_s23 + $0x18] sm:$0xff]  ;;  %v1658_v18 = vld [vmem:[%s2269_s23] sm:$0xff]  ;;  %vm1408_vm10 = vcmask 523264   ;;  %s1428_s28 = scalar_lea.sflag [#allocation3], %s537_s19 }
  0x1d   : > { %s543_s18 = scalar_lea.vmem %s2268_s30, %s1507_s22  ;;  %v1663_v16 = vld [vmem:[%s2269_s23 + $0x28] sm:$0xff]  ;;  %v1665_v17 = vld [vmem:[%s2269_s23 + $0x38] sm:$0xff]  ;;  %701 = vmatpush.bf16.msra.mxu0 %v1659_v14  ;;  %726 = vmatpush.bf16.msra.mxu1 %v1661_v15  ;;  %v1660_v19 = vld [vmem:[%s2269_s23 + $0x10] sm:$0xff]  ;;  %s1438_s22 = scalar_lea.hbm %s2250_s17, %s1655_s26 }
  0x1e   : > { %v1977_v0 = vld [vmem:[%s543_s18] sm:$0xff]  ;;  %751 = vmatpush.bf16.msra.mxu2 %v1663_v16  ;;  %776 = vmatpush.bf16.msra.mxu3 %v1665_v17  ;;  %v1664_v21 = vld [vmem:[%s2269_s23 + $0x30] sm:$0xff]  ;;  %v1667_v23 = vld [vmem:[%s2270_s3 + $0x8] sm:$0xff]  ;;  %s1506_s18 = sshll.u32 %s537_s19, 3 }
  0x1f   : > { %v630_v1 = vsel %vm629_vm0, %v1977_v0, 0.0  ;;  %v1662_v20 = vld [vmem:[%s2269_s23 + $0x20] sm:$0xff]  ;;  %v1669_v24 = vld [vmem:[%s2270_s3 + $0x18] sm:$0xff]  ;;  %v1671_v25 = vld [vmem:[%s2270_s3 + $0x28] sm:$0xff]  ;;  %s539_s29 = scalar_lea.vmem [#allocation2], %s1506_s18  ;;  %s1789_s18 = scalar_lea.hbm %s2250_s17, 16 }
  0x20   : > { %631 = vadd.xlane.f32.xlu0 %v630_v1  ;;  %v1673_v27 = vld [vmem:[%s2270_s3 + $0x38] sm:$0xff]  ;;  %v1666_v28 = vld [vmem:[%s2270_s3] sm:$0xff]  ;;  %v1668_v29 = vld [vmem:[%s2270_s3 + $0x10] sm:$0xff]  ;;  %s1440_s30 = sshll.u32 %s539_s29, 4  ;;  %s1441_s30 = int_to_ptr.vmem [resolvable:$true] %s1440_s30 }
  0x21   : > { %v1748_v3 = vpop.eup %1747  ;;  %702 = vmatpush.bf16.msra.mxu0 %v1658_v18  ;;  %727 = vmatpush.bf16.msra.mxu1 %v1660_v19  ;;  %v1670_v31 = vld [vmem:[%s2270_s3 + $0x20] sm:$0xff]  ;;  %v1672_v32 = vld [vmem:[%s2270_s3 + $0x30] sm:$0xff]  ;;  %v1681_v49 = vld [vmem:[%s2238_s5 + $0x38] sm:$0xff] }
  0x22   : > { %v634_v4 = vmul.f32 32.0, %v1748_v3  ;;  %vm638_vm1 = vweird.f32 %v1748_v3  ;;  %752 = vmatpush.bf16.msra.mxu2 %v1662_v20  ;;  %777 = vmatpush.bf16.msra.mxu3 %v1664_v21  ;;  %v1674_v50 = vld [vmem:[%s2238_s5] sm:$0xff]  ;;  %v1676_v51 = vld [vmem:[%s2238_s5 + $0x10] sm:$0xff] }
  0x23   : > { %v1678_v52 = vld [vmem:[%s2238_s5 + $0x20] sm:$0xff]  ;;  %v1680_v53 = vld [vmem:[%s2238_s5 + $0x30] sm:$0xff] }
  0x24   : > { %v635_v5 = vsub.f32 1.0, %v634_v4  ;;  %v1734_v60 = vld [vmem:[%s2237_s4] ss:$0 sm:$0xff]  ;;  %v1735_v61 = vld [vmem:[%s2237_s4 + $0x1] ss:$0 sm:$0xff] }
  0x25   : > { %813 = vmatpush.bf16.msrb.mxu0 %v1667_v23  ;;  %838 = vmatpush.bf16.msrb.mxu1 %v1669_v24  ;;  %v1730_v1 = vld [vmem:[%s2271_s2] ss:$0 sm:$0xff]  ;;  %v1731_v2 = vld [vmem:[%s2271_s2 + $0x1] ss:$0 sm:$0xff]  ;;  %v1732_v16 = vld [vmem:[%s2271_s2 + $0x2] ss:$0 sm:$0xff] }
  0x26   : > { %v636_v6 = vmul.f32 %v1748_v3, %v635_v5  ;;  %863 = vmatpush.bf16.msrb.mxu2 %v1671_v25  ;;  %888 = vmatpush.bf16.msrb.mxu3 %v1673_v27  ;;  %v1733_v17 = vld [vmem:[%s2271_s2 + $0x3] ss:$0 sm:$0xff]  ;;  %s1442_s2 = sshll.u32 %s1438_s22, 4  ;;  %s1443_s2 = int_to_ptr.hbm [resolvable:$true] %s1442_s2 }
  0x27   : > { %s1783_s3 = sshra.s32 %s1443_s2, 4  ;;  %s1784_s3 = int_to_ptr.hbm [resolvable:$true] %s1783_s3 }
  0x28   : > { %v637_v7 = vadd.f32 %v1748_v3, %v636_v6  ;;  %s1785_s24 = scalar_lea.hbm %s1784_s3, 8  ;;  %p1790_p0 = scmp.lt.s32.totalorder %s1784_s3, %s2250_s17 }
  0x29   : > { %814 = vmatpush.bf16.msrb.mxu0 %v1666_v28  ;;  %839 = vmatpush.bf16.msrb.mxu1 %v1668_v29  ;;  %p1786_p11 = scmp.ne.s32.totalorder %s1784_s3, %s1785_s24  ;;  %p1791_p1 = scmp.lt.s32.totalorder %s1789_s18, %s1785_s24 }
  0x2a   : > { %v1981_v8 = vsel %vm638_vm1, %v1748_v3, %v637_v7  ;;  %864 = vmatpush.bf16.msrb.mxu2 %v1670_v31  ;;  %889 = vmatpush.bf16.msrb.mxu3 %v1672_v32 }
  0x2b   : > { %p1787_p12 = pnand %p1786_p11, %p1962_p5  ;;  %p1792_p2 = por %p1791_p1, %p1790_p0 }
  0x2d   : > { %p1788_p13 = pneg %p1787_p12 }
  0x2f   : > { %p1793_p3 = pnand %p1792_p2, %p1788_p13 }
  0x93   : > { %v632_v9 = vpop.xlane.xlu0 %631 }
  0x94   : > { %v640_v10 = vmul.f32 %v1981_v8, %v632_v9 }
  0x96   : > { %v641_v11 = vsub.f32 %v1977_v0, %v640_v10 }
  0x98   : > { %v642_v12 = vmul.f32 %v641_v11, %v641_v11 }
  0x9a   : > { %v643_v13 = vsel %vm629_vm0, %v642_v12, 0.0  ;;  %v1736_v12 = vld [vmem:[%s2237_s4 + $0x2] ss:$0 sm:$0xff] }
  0x9b   : > { %644 = vadd.xlane.f32.xlu0 %v643_v13  ;;  %v1737_v13 = vld [vmem:[%s2237_s4 + $0x3] ss:$0 sm:$0xff] }
 0x10e   : > { %v645_v22 = vpop.xlane.xlu0 %644 }
 0x10f   : > { %v646_v26 = vmul.f32 %v645_v22, %v1981_v8 }
 0x111   : > { %v647_v30 = vadd.f32 1e-05, %v646_v26 }
 0x113   : > { %1749 = vrsqrt.f32 %v647_v30  ;;  %vm654_vm3 = vweird.f32 %v647_v30 }
 0x119   : > { %v1750_v33 = vpop.eup %1749 }
 0x11a   : > { %v649_v34 = vmul.f32 %v1750_v33, %v647_v30  ;;  %vm655_vm2 = vweird.f32 %v1750_v33 }
 0x11b   : > { %vm656_vm4 = vmor %vm654_vm3, %vm655_vm2 }
 0x11c   : > { %v650_v35 = vmul.f32 %v1750_v33, %v649_v34  ;;  %v1738_v34 = vld [vmem:[%s2239_s6] ss:$0 sm:$0xff] }
 0x11e   : > { %v651_v36 = vmul.f32 0.5, %v650_v35  ;;  %v1739_v35 = vld [vmem:[%s2239_s6 + $0x1] ss:$0 sm:$0xff] }
 0x120   : > { %v652_v37 = vsub.f32 1.5, %v651_v36 }
 0x122   : > { %v653_v38 = vmul.f32 %v1750_v33, %v652_v37 }
 0x124   : > { %v657_v40 = vsel %vm656_vm4, %v1750_v33, %v653_v38 }
 0x125   : > { %v658_v42 = vmul.f32 %v657_v40, %v641_v11 }
 0x127   : > { %v662_v43 = vmul.f32 %v1728_v39, %v658_v42 }
 0x129   : > { %v666_v44 = vadd.f32 %v1729_v41, %v662_v43 }
 0x12b   : > { %v667_v45 = vpack.c.bf16 %v666_v44, %v666_v44 }
 0x12d   : > { %1516 = vmatmul.msk.bf16.vlgmr.msra.gmra.mxu0 %vm629_vm0, %v667_v45  ;;  %1525 = vmatmul.msk.bf16.vlgmr.msra.gmra.mxu1 %vm629_vm0, %v667_v45 }
 0x12e   : > { %1534 = vmatmul.msk.bf16.vlgmr.msra.gmra.mxu2 %vm629_vm0, %v667_v45  ;;  %1543 = vmatmul.msk.bf16.vlgmr.msra.gmra.mxu3 %vm629_vm0, %v667_v45 }
 0x12f   : > { %925 = vmatpush.bf16.msra.mxu0 %v1675_v46  ;;  %950 = vmatpush.bf16.msra.mxu1 %v1677_v47 }
 0x130   : > { %975 = vmatpush.bf16.msra.mxu2 %v1679_v48  ;;  %1000 = vmatpush.bf16.msra.mxu3 %v1681_v49  ;;  %v1740_v48 = vld [vmem:[%s2239_s6 + $0x2] ss:$0 sm:$0xff]  ;;  %v1741_v49 = vld [vmem:[%s2239_s6 + $0x3] ss:$0 sm:$0xff] }
 0x133   : > { %926 = vmatpush.bf16.msra.mxu0 %v1674_v50  ;;  %951 = vmatpush.bf16.msra.mxu1 %v1676_v51 }
 0x134   : > { %976 = vmatpush.bf16.msra.mxu2 %v1678_v52  ;;  %1001 = vmatpush.bf16.msra.mxu3 %v1680_v53 }
 0x13d   : > { %1552 = vmatmul.msk.bf16.vlgmr.msrb.gmra.mxu0 %vm629_vm0, %v667_v45  ;;  %1561 = vmatmul.msk.bf16.vlgmr.msrb.gmra.mxu1 %vm629_vm0, %v667_v45 }
 0x13e   : > { %1570 = vmatmul.msk.bf16.vlgmr.msrb.gmra.mxu2 %vm629_vm0, %v667_v45  ;;  %1579 = vmatmul.msk.bf16.vlgmr.msrb.gmra.mxu3 %vm629_vm0, %v667_v45 }
 0x14d   : > { %1588 = vmatmul.msk.bf16.vlgmr.msra.gmra.mxu0 %vm629_vm0, %v667_v45  ;;  %1597 = vmatmul.msk.bf16.vlgmr.msra.gmra.mxu1 %vm629_vm0, %v667_v45 }
 0x14e   : > { %1606 = vmatmul.msk.bf16.vlgmr.msra.gmra.mxu2 %vm629_vm0, %v667_v45  ;;  %1615 = vmatmul.msk.bf16.vlgmr.msra.gmra.mxu3 %vm629_vm0, %v667_v45 }
 0x1aa   : > { %v704_v54 = vpop.f32.mrf.mxu0  ;;  %v729_v55 = vpop.f32.mrf.mxu1 }
 0x1ab   : > { %v705_v10 = vadd.f32 %v1730_v1, %v704_v54  ;;  %v730_v11 = vadd.f32 %v1731_v2, %v729_v55 }
 0x1ad   : > { %v1007_v20 = vmul.f32 0.35355338, %v705_v10  ;;  %v1008_v21 = vmul.f32 0.35355338, %v730_v11 }
 0x1af   : > { %v1011_v30 = vpack.c.bf16 %v1007_v20, %v1007_v20  ;;  %v1012_v31 = vpack.c.bf16 %v1008_v21, %v1008_v21 }
 0x1b1   : > { %v754_v56 = vpop.f32.mrf.mxu2  ;;  %v779_v57 = vpop.f32.mrf.mxu3 }
 0x1b2   : > { %v706_v58 = vpop.f32.mrf.mxu0  ;;  %v731_v59 = vpop.f32.mrf.mxu1  ;;  %v755_v26 = vadd.f32 %v1732_v16, %v754_v56  ;;  %v780_v27 = vadd.f32 %v1733_v17, %v779_v57 }
 0x1b4   : > { %v1009_v36 = vmul.f32 0.35355338, %v755_v26  ;;  %v1010_v37 = vmul.f32 0.35355338, %v780_v27 }
 0x1b6   : > { %v1013_v44 = vpack.c.bf16 %v1009_v36, %v1009_v36  ;;  %v1014_v45 = vpack.c.bf16 %v1010_v37, %v1010_v37 }
 0x1b9   : > { %v756_v62 = vpop.f32.mrf.mxu2  ;;  %v781_v63 = vpop.f32.mrf.mxu3 }
 0x1ba   : > { %v816_v3 = vpop.f32.mrf.mxu0  ;;  %v841_v4 = vpop.f32.mrf.mxu1 }
 0x1bb   : > { %v817_v5 = vadd.f32 %v1734_v60, %v816_v3  ;;  %v842_v6 = vadd.f32 %v1735_v61, %v841_v4 }
 0x1bd   : > { %v1015_v7 = vpack.c.bf16 %v817_v5, %v817_v5  ;;  %v1016_v9 = vpack.c.bf16 %v842_v6, %v842_v6 }
 0x1bf   : > { %v1024_v14 = vsel %vm1019_vm5, %v1015_v7, 0  ;;  %v1043_v15 = vsel %vm1019_vm5, %v1016_v9, 0 }
 0x1c0   : > { %1033 = vmatpush.bf16.xpose.msrb.mxu0 %v1024_v14  ;;  %1052 = vmatpush.bf16.xpose.msrb.mxu1 %v1043_v15 }
 0x1c1   : > { %v866_v18 = vpop.f32.mrf.mxu2  ;;  %v891_v19 = vpop.f32.mrf.mxu3 }
 0x1c2   : > { %v867_v22 = vadd.f32 %v1736_v12, %v866_v18  ;;  %v892_v23 = vadd.f32 %v1737_v13, %v891_v19  ;;  %v818_v24 = vpop.f32.mrf.mxu0  ;;  %v843_v25 = vpop.f32.mrf.mxu1 }
 0x1c4   : > { %v1017_v28 = vpack.c.bf16 %v867_v22, %v867_v22  ;;  %v1018_v29 = vpack.c.bf16 %v892_v23, %v892_v23 }
 0x1c6   : > { %v1062_v32 = vsel %vm1019_vm5, %v1017_v28, 0  ;;  %v1081_v33 = vsel %vm1019_vm5, %v1018_v29, 0 }
 0x1c7   : > { %1071 = vmatpush.bf16.xpose.msrb.mxu2 %v1062_v32  ;;  %1090 = vmatpush.bf16.xpose.msrb.mxu3 %v1081_v33 }
 0x1c8   : > { %1616 = vmatmul.msk.bf16.vlgmr.msrb.gmra.mxu0 %vm1019_vm5, %v1011_v30  ;;  %1617 = vmatmul.msk.bf16.vlgmr.msrb.gmra.mxu1 %vm1019_vm5, %v1012_v31 }
 0x1c9   : > { %v868_v38 = vpop.f32.mrf.mxu2  ;;  %v893_v39 = vpop.f32.mrf.mxu3 }
 0x1ca   : > { %v928_v40 = vpop.f32.mrf.mxu0  ;;  %v953_v41 = vpop.f32.mrf.mxu1  ;;  %v606_v38 = vld [vmem:[%s2240_s7] sm:$0xf] }
 0x1cb   : > { %v929_v42 = vadd.f32 %v1738_v34, %v928_v40  ;;  %v954_v43 = vadd.f32 %v1739_v35, %v953_v41  ;;  %v1233_v39 = vsel %vm1143_vm6, %v606_v38, 0  ;;  %v607_v40 = vld [vmem:[%s2240_s7 + $0x4] sm:$0xf] }
 0x1cc   : > { %v1252_v41 = vsel %vm1143_vm6, %v607_v40, 0 }
 0x1cd   : > { %v1136_v46 = vpack.c.bf16 %v929_v42, %v929_v42  ;;  %v1137_v47 = vpack.c.bf16 %v954_v43, %v954_v43  ;;  %v608_v42 = vld [vmem:[%s2240_s7 + $0x8] sm:$0xf] }
 0x1ce   : > { %1618 = vmatmul.msk.bf16.vlgmr.msrb.gmra.mxu2 %vm1019_vm5, %v1013_v44  ;;  %1619 = vmatmul.msk.bf16.vlgmr.msrb.gmra.mxu3 %vm1019_vm5, %v1014_v45  ;;  %v1271_v43 = vsel %vm1143_vm6, %v608_v42, 0  ;;  %v609_v45 = vld [vmem:[%s2240_s7 + $0xc] sm:$0xf] }
 0x1cf   : > { %v1145_v50 = vsel %vm1143_vm6, %v1136_v46, 0  ;;  %v1164_v51 = vsel %vm1143_vm6, %v1137_v47, 0  ;;  %v1290_v46 = vsel %vm1143_vm6, %v609_v45, 0 }
 0x1d0   : > { %1154 = vmatpush.bf16.msra.mxu0 %v1145_v50  ;;  %1173 = vmatpush.bf16.msra.mxu1 %v1164_v51 }
 0x1d1   : > { %v978_v52 = vpop.f32.mrf.mxu2  ;;  %v1003_v53 = vpop.f32.mrf.mxu3 }
 0x1d2   : > { %v979_v54 = vadd.f32 %v1740_v48, %v978_v52  ;;  %v1004_v55 = vadd.f32 %v1741_v49, %v1003_v53  ;;  %v930_v56 = vpop.f32.mrf.mxu0  ;;  %v955_v57 = vpop.f32.mrf.mxu1 }
 0x1d4   : > { %v1138_v58 = vpack.c.bf16 %v979_v54, %v979_v54  ;;  %v1139_v59 = vpack.c.bf16 %v1004_v55, %v1004_v55  ;;  %1242 = vmatpush.bf16.msrb.mxu0 %v1233_v39  ;;  %1261 = vmatpush.bf16.msrb.mxu1 %v1252_v41 }
 0x1d6   : > { %v1183_v60 = vsel %vm1143_vm6, %v1138_v58, 0  ;;  %v1202_v61 = vsel %vm1143_vm6, %v1139_v59, 0 }
 0x1d7   : > { %1192 = vmatpush.bf16.msra.mxu2 %v1183_v60  ;;  %1211 = vmatpush.bf16.msra.mxu3 %v1202_v61 }
 0x1d9   : > { %v980_v62 = vpop.f32.mrf.mxu2  ;;  %v1005_v63 = vpop.f32.mrf.mxu3 }
 0x1db   : > { %1280 = vmatpush.bf16.msrb.mxu2 %v1271_v43  ;;  %1299 = vmatpush.bf16.msrb.mxu3 %v1290_v46  ;;  %v1744_v46 = vld [vmem:[%s2249_s16] ss:$0 sm:$0xff] }
 0x245   : > { %v1035_v1 = vpop.f32.mrf.mxu0  ;;  %v1054_v2 = vpop.f32.mrf.mxu1 }
 0x246   : > { %v1096_v3 = vsel %vm1019_vm5, %v1035_v1, -inf  ;;  %v1099_v6 = vsel %vm1019_vm5, %v1054_v2, -inf }
 0x247   : > { %1097 = vmax.xlane.f32.xlu2 %v1096_v3 }
 0x24d   : > { %v1037_v4 = vpop.f32.mrf.mxu0  ;;  %v1056_v5 = vpop.f32.mrf.mxu1 }
 0x24f   : > { %1100 = vmax.xlane.f32.xlu2 %v1099_v6 }
 0x251   : > { %v1073_v7 = vpop.f32.mrf.mxu2  ;;  %v1092_v9 = vpop.f32.mrf.mxu3 }
 0x252   : > { %v1102_v10 = vsel %vm1019_vm5, %v1073_v7, -inf  ;;  %v1105_v13 = vsel %vm1019_vm5, %v1092_v9, -inf }
 0x253   : > { %1103 = vmax.xlane.f32.xlu1 %v1102_v10 }
 0x259   : > { %v1075_v11 = vpop.f32.mrf.mxu2  ;;  %v1094_v12 = vpop.f32.mrf.mxu3 }
 0x25b   : > { %1106 = vmax.xlane.f32.xlu1 %v1105_v13 }
 0x2ba   : > { %v1098_v14 = vpop.xlane.xlu2 %1097 }
 0x2bb   : > { %v1108_v15 = vsub.f32 %v1035_v1, %v1098_v14 }
 0x2bd   : > { %v1112_v16 = vmul.f32 1.442695, %v1108_v15 }
 0x2bf   : > { %1751 = vpow2.f32 %v1112_v16 }
 0x2c2   : > { %v1101_v17 = vpop.xlane.xlu2 %1100 }
 0x2c3   : > { %v1109_v18 = vsub.f32 %v1054_v2, %v1101_v17 }
 0x2c5   : > { %v1752_v19 = vpop.eup %1751  ;;  %v1114_v20 = vmul.f32 1.442695, %v1109_v18 }
 0x2c6   : > { %v1132_v21 = vpack.c.bf16 %v1752_v19, %v1752_v19  ;;  %v1104_v22 = vpop.xlane.xlu1 %1103  ;;  %v1120_v23 = vsel %vm1019_vm5, %v1752_v19, 0.0 }
 0x2c7   : > { %1753 = vpow2.f32 %v1114_v20  ;;  %v1110_v24 = vsub.f32 %v1073_v7, %v1104_v22  ;;  %1121 = vadd.xlane.f32.xlu2 %v1120_v23  ;;  %v1742_v20 = vld [vmem:[%s2241_s8] ss:$0 sm:$0xff] }
 0x2c8   : > { %1620 = vmatmul.msk.bf16.vlgmr.msra.gmra.mxu0 %vm1019_vm5, %v1132_v21 }
 0x2c9   : > { %v1116_v25 = vmul.f32 1.442695, %v1110_v24 }
 0x2cb   : > { %1755 = vpow2.f32 %v1116_v25 }
 0x2cd   : > { %v1754_v26 = vpop.eup %1753 }
 0x2ce   : > { %v1133_v27 = vpack.c.bf16 %v1754_v26, %v1754_v26  ;;  %v1107_v28 = vpop.xlane.xlu1 %1106  ;;  %v1123_v37 = vsel %vm1019_vm5, %v1754_v26, 0.0 }
 0x2cf   : > { %v1111_v29 = vsub.f32 %v1092_v9, %v1107_v28 }
 0x2d0   : > { %1621 = vmatmul.msk.bf16.vlgmr.msra.gmra.mxu1 %vm1019_vm5, %v1133_v27 }
 0x2d1   : > { %v1756_v30 = vpop.eup %1755  ;;  %v1118_v31 = vmul.f32 1.442695, %v1111_v29 }
 0x2d2   : > { %v1134_v32 = vpack.c.bf16 %v1756_v30, %v1756_v30  ;;  %v1126_v33 = vsel %vm1019_vm5, %v1756_v30, 0.0 }
 0x2d3   : > { %1757 = vpow2.f32 %v1118_v31  ;;  %1127 = vadd.xlane.f32.xlu0 %v1126_v33  ;;  %v1687_v33 = vld [vmem:[%s2246_s13 + $0x18] sm:$0xff] }
 0x2d4   : > { %1622 = vmatmul.msk.bf16.vlgmr.msra.gmra.mxu2 %vm1019_vm5, %v1134_v32  ;;  %v1683_v32 = vld [vmem:[%s2244_s11 + $0x8] sm:$0xff]  ;;  %1416 = vmatpush.bf16.msra.mxu1 %v1687_v33 }
 0x2d5   : > { %1372 = vmatpush.bf16.msra.mxu0 %v1683_v32 }
 0x2d9   : > { %v1758_v34 = vpop.eup %1757 }
 0x2da   : > { %v1135_v35 = vpack.c.bf16 %v1758_v34, %v1758_v34  ;;  %v1129_v36 = vsel %vm1019_vm5, %v1758_v34, 0.0 }
 0x2db   : > { %1130 = vadd.xlane.f32.xlu1 %v1129_v36  ;;  %1124 = vadd.xlane.f32.xlu0 %v1123_v37  ;;  %v1686_v36 = vld [vmem:[%s2246_s13 + $0x10] sm:$0xff] }
 0x2dc   : > { %1623 = vmatmul.msk.bf16.vlgmr.msra.gmra.mxu3 %vm1019_vm5, %v1135_v35  ;;  %1417 = vmatpush.bf16.msra.mxu1 %v1686_v36 }
 0x33a   : > { %v1122_v44 = vpop.xlane.xlu2 %1121 }
 0x33b   : > { %1759 = vrcp.f32 %v1122_v44 }
 0x341   : > { %v1760_v47 = vpop.eup %1759 }
 0x345   : > { %v1156_v48 = vpop.f32.mrf.mxu0 }
 0x346   : > { %v1221_v49 = vmul.f32 %v1760_v47, %v1156_v48  ;;  %v1128_v50 = vpop.xlane.xlu0 %1127 }
 0x348   : > { %v1225_v51 = vpack.c.bf16 %v1221_v49, %v1221_v49 }
 0x34a   : > { %1624 = vmatmul.msk.bf16.vlgmr.msrb.gmra.mxu0 %vm1019_vm5, %v1225_v51  ;;  %v1684_v51 = vld [vmem:[%s2246_s13] sm:$0xff] }
 0x34d   : > { %v1158_v52 = vpop.f32.mrf.mxu0  ;;  %v1175_v53 = vpop.f32.mrf.mxu1 }
 0x34e   : > { %v1125_v54 = vpop.xlane.xlu0 %1124  ;;  %v1131_v57 = vpop.xlane.xlu1 %1130  ;;  %v1745_v52 = vld [vmem:[%s2245_s12] ss:$0 sm:$0xff] }
 0x34f   : > { %1761 = vrcp.f32 %v1125_v54 }
 0x350   : > { %1763 = vrcp.f32 %v1128_v50  ;;  %v1685_v50 = vld [vmem:[%s2246_s13 + $0x8] sm:$0xff] }
 0x351   : > { %1765 = vrcp.f32 %v1131_v57  ;;  %1418 = vmatpush.bf16.msra.mxu1 %v1685_v50 }
 0x355   : > { %v1177_v55 = vpop.f32.mrf.mxu1  ;;  %v1762_v56 = vpop.eup %1761  ;;  %1419 = vmatpush.bf16.msra.mxu1 %v1684_v51 }
 0x356   : > { %v1764_v58 = vpop.eup %1763  ;;  %v1222_v59 = vmul.f32 %v1762_v56, %v1175_v53 }
 0x357   : > { %v1194_v60 = vpop.f32.mrf.mxu2  ;;  %v1766_v1 = vpop.eup %1765 }
 0x358   : > { %v1223_v61 = vmul.f32 %v1764_v58, %v1194_v60  ;;  %v1226_v62 = vpack.c.bf16 %v1222_v59, %v1222_v59  ;;  %v1746_v58 = vld [vmem:[%s2247_s14] ss:$0 sm:$0xff] }
 0x35a   : > { %v1227_v63 = vpack.c.bf16 %v1223_v61, %v1223_v61  ;;  %1625 = vmatmul.msk.bf16.vlgmr.msrb.gmra.mxu1 %vm1019_vm5, %v1226_v62 }
 0x35c   : > { %1626 = vmatmul.msk.bf16.vlgmr.msrb.gmra.mxu2 %vm1019_vm5, %v1227_v63 }
 0x35f   : > { %v1196_v2 = vpop.f32.mrf.mxu2  ;;  %v1213_v3 = vpop.f32.mrf.mxu3 }
 0x360   : > { %v1224_v4 = vmul.f32 %v1766_v1, %v1213_v3 }
 0x362   : > { %v1228_v5 = vpack.c.bf16 %v1224_v4, %v1224_v4 }
 0x364   : > { %1627 = vmatmul.msk.bf16.vlgmr.msrb.gmra.mxu3 %vm1019_vm5, %v1228_v5 }
 0x367   : > { %v1215_v6 = vpop.f32.mrf.mxu3 }
 0x3c7   : > { %v1244_v7 = vpop.f32.mrf.mxu0 }
 0x3c8   : > { %v1305_v14 = vsel %vm629_vm0, %v1244_v7, 0.0 }
 0x3cf   : > { %v1246_v9 = vpop.f32.mrf.mxu0 }
 0x3d7   : > { %v1263_v10 = vpop.f32.mrf.mxu1 }
 0x3d8   : > { %v1306_v13 = vsel %vm629_vm0, %v1263_v10, 0.0 }
 0x3d9   : > { %v1307_v16 = vadd.f32 %v1306_v13, %v1305_v14 }
 0x3df   : > { %v1282_v11 = vpop.f32.mrf.mxu2  ;;  %v1265_v12 = vpop.f32.mrf.mxu1 }
 0x3e0   : > { %v1308_v15 = vsel %vm629_vm0, %v1282_v11, 0.0 }
 0x3e1   : > { %v1309_v17 = vadd.f32 %v1308_v15, %v1307_v16 }
 0x3e7   : > { %v1284_v18 = vpop.f32.mrf.mxu2  ;;  %v1301_v19 = vpop.f32.mrf.mxu3 }
 0x3e8   : > { %v1310_v21 = vsel %vm629_vm0, %v1301_v19, 0.0 }
 0x3e9   : > { %v1311_v22 = vadd.f32 %v1310_v21, %v1309_v17 }
 0x3eb   : > { %v1315_v23 = vadd.f32 %v1742_v20, %v1311_v22 }
 0x3ed   : > { %v1316_v24 = vadd.f32 %v1315_v23, %v1977_v0  ;;  %v1682_v0 = vld [vmem:[%s2244_s11] sm:$0xff] }
 0x3ee   : > { %1373 = vmatpush.bf16.msra.mxu0 %v1682_v0 }
 0x3ef   : > { %v1303_v25 = vpop.f32.mrf.mxu3  ;;  %v1317_v26 = vsel %vm629_vm0, %v1316_v24, 0.0 }
 0x3f0   : > { %1318 = vadd.xlane.f32.xlu1 %v1317_v26 }
 0x463   : > { %v1319_v27 = vpop.xlane.xlu1 %1318 }
 0x464   : > { %v1320_v28 = vmul.f32 %v1319_v27, %v1981_v8 }
 0x466   : > { %v1321_v29 = vsub.f32 %v1316_v24, %v1320_v28 }
 0x468   : > { %v1322_v30 = vmul.f32 %v1321_v29, %v1321_v29 }
 0x46a   : > { %v1323_v31 = vsel %vm629_vm0, %v1322_v30, 0.0 }
 0x46b   : > { %1324 = vadd.xlane.f32.xlu2 %v1323_v31 }
 0x4de   : > { %v1325_v34 = vpop.xlane.xlu2 %1324 }
 0x4df   : > { %v1326_v35 = vmul.f32 %v1325_v34, %v1981_v8  ;;  %v1743_v8 = vld [vmem:[%s2248_s15] ss:$0 sm:$0xff] }
 0x4e1   : > { %v1327_v37 = vadd.f32 1e-05, %v1326_v35 }
 0x4e3   : > { %1767 = vrsqrt.f32 %v1327_v37  ;;  %vm1334_vm8 = vweird.f32 %v1327_v37 }
 0x4e9   : > { %v1768_v38 = vpop.eup %1767 }
 0x4ea   : > { %v1329_v39 = vmul.f32 %v1768_v38, %v1327_v37  ;;  %vm1335_vm7 = vweird.f32 %v1768_v38 }
 0x4eb   : > { %vm1336_vm9 = vmor %vm1334_vm8, %vm1335_vm7 }
 0x4ec   : > { %v1330_v40 = vmul.f32 %v1768_v38, %v1329_v39 }
 0x4ee   : > { %v1331_v41 = vmul.f32 0.5, %v1330_v40 }
 0x4f0   : > { %v1332_v42 = vsub.f32 1.5, %v1331_v41 }
 0x4f2   : > { %v1333_v43 = vmul.f32 %v1768_v38, %v1332_v42 }
 0x4f4   : > { %v1337_v44 = vsel %vm1336_vm9, %v1768_v38, %v1333_v43 }
 0x4f5   : > { %v1338_v45 = vmul.f32 %v1337_v44, %v1321_v29 }
 0x4f7   : > { %v1342_v47 = vmul.f32 %v1743_v8, %v1338_v45 }
 0x4f9   : > { %v1346_v48 = vadd.f32 %v1744_v46, %v1342_v47 }
 0x4fb   : > { %v1347_v49 = vpack.c.bf16 %v1346_v48, %v1346_v48 }
 0x4fd   : > { %1636 = vmatmul.msk.bf16.vlgmr.msra.gmra.mxu0 %vm629_vm0, %v1347_v49 }
 0x57a   : > { %v1375_v53 = vpop.f32.mrf.mxu0 }
 0x57b   : > { %v1376_v54 = vadd.f32 %v1745_v52, %v1375_v53 }
 0x57d   : > { %v1379_v55 = vmax.f32 %v1376_v54, 0.0 }
 0x57f   : > { %v1380_v56 = vpack.c.bf16 %v1379_v55, %v1379_v55 }
 0x581   : > { %1653 = vmatmul.msk.bf16.vlgmr.msra.gmra.mxu1 %vm1408_vm10, %v1380_v56 }
 0x582   : > { %v1377_v57 = vpop.f32.mrf.mxu0 }
 0x5fe   : > { %v1421_v59 = vpop.f32.mrf.mxu1 }
 0x5ff   : > { %v1422_v60 = vadd.f32 %v1746_v58, %v1421_v59 }
 0x601   : > { %v1425_v61 = vadd.f32 %v1422_v60, %v1316_v24 }
 0x603   : > { %1426 = vst.msk [vmem:[%s539_s29] sm:$0xff] %vm629_vm0, %v1425_v61 }
 0x604   : > { %1796 = shalt.err (!%p1793_p3)
}
 0x605   : > { %1688 = dma.vmem_to_hbm [thread:$0]  (%p1962_p5), %s1441_s30, 128, %s1443_s2, %s1428_s28  }
 0x606   : > { %v1423_v62 = vpop.f32.mrf.mxu1 }
 0x607 PF: > { %s2272_s19 = sld [smem:[#allocation5_spill]]  ;;  %p1694_p4 = scmp.ge.s32.totalorder %s1831_s27, 2 }
 0x609   : > { %p1691_p7 = pnand %p1694_p4, %p1966_p6 }
 0x60b   : > { %p1692_p8 = pneg %p1691_p7 }
 0x60d   : > { %s1454_s29 = sand.u32 1, %s2272_s19  }
 0x60e   : > { %s1455_s0 = scalar_lea.sflag [#allocation3], %s1454_s29 }
 0x60f   : > { %1814 = dma.done.wait (%p1692_p8), %s1455_s0, 128  }
 0x610   : > { %1816 = vsyncadd (%p1692_p8), %s1455_s0, 4294967168  ;;  %s2274_s27 = sld [smem:[#allocation7_spill]]  ;;  %s2277_s24 = smov %s1823_s25 }
 0x611   : > { %s2275_s3 = sld [smem:[#allocation6_spill]] }
 0x612   : > { %s2276_s26 = sld [smem:[#allocation8_spill]] }
 0x616   : > { %p27_p9 = scmp.ge.s32.totalorder %s2274_s27, 4  }
 0x617   : > { %s2278_s25 = smov %s2275_s3 }
 0x618   :  { %29 = sbr.rel (!%p27_p9) target bundleno = 8 (0x8), region = 123 }
 0x61d   :  { %1461 = vsyncpa [#allocation3], 1 }
 0x61e   :  { %1463 = vsyncpa [#allocation3 + $0x1], 1 }

</bundles_post_ra>
